<compile_context>
chip_gen: v7x
topology: tpu7x:2x2x1
jax: 0.10.0
libtpu: 0.0.40
codegen_flags: <defaults>
</compile_context>

<pallas_src>
import functools

import jax
import jax.numpy as jnp
from jax import lax
from jax.experimental import pallas as pl
from jax.experimental.pallas import tpu as pltpu


_IGNORE_INDEX = -100  # torch.nn.CrossEntropyLoss default


def _ce_kernel(logits_ref, targets_ref, out_ref, m_ref, l_ref, t_ref,
               *, N, C, TN, TC):
    ri = pl.program_id(0)          # row-tile index
    ci = pl.program_id(1)          # class-tile index (innermost, 'arbitrary')
    nc = pl.num_programs(1)

    # ---- reset per-row running stats at the first class tile ----
    @pl.when(ci == 0)
    def _():
        m_ref[...] = jnp.full((TN, 1), -jnp.inf, dtype=jnp.float32)
        l_ref[...] = jnp.zeros((TN, 1), dtype=jnp.float32)
        t_ref[...] = jnp.zeros((TN, 1), dtype=jnp.float32)

    # Cast this tile to f32 in VMEM (HBM traffic stays in the native dtype).
    x = logits_ref[...].astype(jnp.float32)                        # (TN, TC)

    # Mask padded class columns (partial last class tile) to -inf.
    col_ids = ci * TC + lax.broadcasted_iota(jnp.int32, (TN, TC), 1)
    col_ok = col_ids < C
    x = jnp.where(col_ok, x, -jnp.inf)

    # ---- online (streaming) log-sum-exp across class tiles ----
    m_prev = m_ref[...]
    m_new = jnp.maximum(m_prev, jnp.max(x, axis=-1, keepdims=True))
    alpha = jnp.exp(m_prev - m_new)
    l_ref[...] = alpha * l_ref[...] + jnp.sum(jnp.exp(x - m_new),
                                              axis=-1, keepdims=True)
    m_ref[...] = m_new

    # ---- gather the target logit contribution from this class tile ----
    tgt = targets_ref[...]                                         # (TN, 1) i32
    hit = jnp.logical_and(col_ids == tgt, col_ok)
    t_ref[...] += jnp.sum(jnp.where(hit, x, 0.0), axis=-1, keepdims=True)

    # ---- finalize at the last class tile: per-row-tile partial (sum, count) ----
    @pl.when(ci == nc - 1)
    def _():
        per_row = jnp.log(l_ref[...]) + m_ref[...] - t_ref[...]    # (TN, 1)
        row_ids = ri * TN + lax.broadcasted_iota(jnp.int32, (TN, 1), 0)
        valid = jnp.logical_and(row_ids < N, tgt != _IGNORE_INDEX)
        out_ref[0, 0] = jnp.sum(jnp.where(valid, per_row, 0.0))
        out_ref[0, 1] = jnp.sum(valid.astype(jnp.float32))


def cross_entropy_loss(logits, targets, *, row_tile=512, class_tile=4096):
    """Mean cross-entropy (ignore_index=-100) over integer targets.

    logits: (N, C) in any float dtype (bf16/f32 kept as-is in HBM).
    targets: (N,) integer class indices.
    """
    N, C = logits.shape
    targets_2d = targets.reshape(N, 1).astype(jnp.int32)

    # Tile sizes: either the full dim (always legal) or an aligned tile
    # (TN multiple of 8, TC multiple of 128); edge tiles are masked in-kernel.
    TN = N if N <= row_tile else row_tile
    TC = C if C <= class_tile else class_tile
    grid = (pl.cdiv(N, TN), pl.cdiv(C, TC))

    itemsize = jnp.dtype(logits.dtype).itemsize
    tile_bytes = TN * TC * itemsize
    # 2x double-buffered logits tile + small targets/scratch/slack, clamped to
    # stay under v7x's 64 MiB physical VMEM.
    vmem_limit = int(min(max(2 * tile_bytes + (8 << 20), 32 << 20), 64 << 20))

    kernel = functools.partial(_ce_kernel, N=N, C=C, TN=TN, TC=TC)

    partials = pl.pallas_call(
        kernel,
        out_shape=jax.ShapeDtypeStruct((grid[0], 2), jnp.float32),
        grid_spec=pltpu.PrefetchScalarGridSpec(
            num_scalar_prefetch=0,
            grid=grid,
            in_specs=[
                # logits tile, streamed over both grid axes
                pl.BlockSpec((TN, TC), lambda ri, ci: (ri, ci)),
                # matching targets tile (resident across the class axis)
                pl.BlockSpec((TN, 1), lambda ri, ci: (ri, 0)),
            ],
            # per-row-tile (sum, count) scalars in SMEM
            out_specs=pl.BlockSpec((1, 2), lambda ri, ci: (ri, 0),
                                   memory_space=pltpu.SMEM),
            scratch_shapes=[
                pltpu.VMEM((TN, 1), jnp.float32),   # running max m
                pltpu.VMEM((TN, 1), jnp.float32),   # running denom l
                pltpu.VMEM((TN, 1), jnp.float32),   # target-logit accumulator
            ],
        ),
        compiler_params=pltpu.CompilerParams(
            dimension_semantics=("parallel", "arbitrary"),
            vmem_limit_bytes=vmem_limit,
        ),
    )(logits, targets_2d)

    total = jnp.sum(partials[:, 0])
    count = jnp.sum(partials[:, 1])
    return total / count


def ce_loss_forward(net_out, targets):
    """Mirror of CELoss.forward(net_out, targets)."""
    return cross_entropy_loss(net_out["logits"], targets)


if __name__ == "__main__":
    key = jax.random.PRNGKey(0)
    k_logits, k_targets = jax.random.split(key)

    # Small but tiling-exercising shapes: N=64 rows, C=160 classes
    # (C is deliberately not a multiple of 128 to exercise edge masking).
    N, C = 64, 160
    logits = jax.random.normal(k_logits, (N, C), dtype=jnp.float32)
    targets = jax.random.randint(k_targets, (N,), 0, C, dtype=jnp.int32)
    targets = targets.at[5].set(_IGNORE_INDEX)   # exercise ignore_index=-100

    net_out = {"logits": logits}

    # Default tiles (single block: TN=N, TC=C).
    loss_single = ce_loss_forward(net_out, targets)
    # Small tiles to exercise the 2-D grid + online LSE + edge masking.
    loss_tiled = cross_entropy_loss(logits, targets, row_tile=16, class_tile=128)
    loss_single = jax.block_until_ready(loss_single)
    loss_tiled = jax.block_until_ready(loss_tiled)

    # Reference (plain JAX) cross-entropy with ignore_index handling.
    logp = jax.nn.log_softmax(logits, axis=-1)
    gather_idx = jnp.where(targets < 0, 0, targets)
    nll = -jnp.take_along_axis(logp, gather_idx[:, None], axis=-1)[:, 0]
    valid = targets != _IGNORE_INDEX
    ref = jnp.sum(jnp.where(valid, nll, 0.0)) / jnp.sum(valid)

    assert jnp.allclose(loss_single, ref, atol=1e-5, rtol=1e-5), (loss_single, ref)
    assert jnp.allclose(loss_tiled, ref, atol=1e-5, rtol=1e-5), (loss_tiled, ref)

    print("KERNEL_OK")
</pallas_src>

<mosaic_0001>
module attributes {stable_mosaic.version = 11 : i64} {
  func.func @_ce_kernel(%arg0: i32, %arg1: i32, %arg2: memref<64x160xf32, #tpu.memory_space<vmem>>, %arg3: memref<64x1xi32, #tpu.memory_space<vmem>>, %arg4: memref<1x2xf32, #tpu.memory_space<smem>>, %arg5: memref<64x1xf32, #tpu.memory_space<vmem>>, %arg6: memref<64x1xf32, #tpu.memory_space<vmem>>, %arg7: memref<64x1xf32, #tpu.memory_space<vmem>>) attributes {dimension_semantics = [#tpu.dimension_semantics<parallel>, #tpu.dimension_semantics<arbitrary>], iteration_bounds = array<i64: 1, 1>, scalar_prefetch = 0 : i64, scratch_operands = 3 : i64, tpu.core_type = #tpu.core_type<tc>, window_params = [{transform_indices = @transform_0, window_bounds = array<i64: 64, 160>}, {transform_indices = @transform_1, window_bounds = array<i64: 64, 1>}, {transform_indices = @transform_2, window_bounds = array<i64: 1, 2>}]} {
    %c0_i32 = arith.constant 0 : i32
    %0 = arith.cmpi eq, %arg1, %c0_i32 : i32
    %1 = arith.extui %0 : i1 to i32
    %c0_i32_0 = arith.constant 0 : i32
    %2 = arith.cmpi ne, %1, %c0_i32_0 : i32
    scf.if %2 {
      %cst_23 = arith.constant 0xFF800000 : f32
      %42 = vector.broadcast %cst_23 : f32 to vector<64x1xf32>
      %c0_24 = arith.constant 0 : index
      %c0_25 = arith.constant 0 : index
      %43 = vector.load %arg5[%c0_24, %c0_25] : memref<64x1xf32, #tpu.memory_space<vmem>>, vector<64x1xf32>
      tpu.vector_store %arg5[%c0_24, %c0_25], %42 {strides = array<i32>} : memref<64x1xf32, #tpu.memory_space<vmem>>, vector<64x1xf32>,
      %cst_26 = arith.constant 0.000000e+00 : f32
      %44 = vector.broadcast %cst_26 : f32 to vector<64x1xf32>
      %c0_27 = arith.constant 0 : index
      %c0_28 = arith.constant 0 : index
      %45 = vector.load %arg6[%c0_27, %c0_28] : memref<64x1xf32, #tpu.memory_space<vmem>>, vector<64x1xf32>
      tpu.vector_store %arg6[%c0_27, %c0_28], %44 {strides = array<i32>} : memref<64x1xf32, #tpu.memory_space<vmem>>, vector<64x1xf32>,
      %cst_29 = arith.constant 0.000000e+00 : f32
      %46 = vector.broadcast %cst_29 : f32 to vector<64x1xf32>
      %c0_30 = arith.constant 0 : index
      %c0_31 = arith.constant 0 : index
      %47 = vector.load %arg7[%c0_30, %c0_31] : memref<64x1xf32, #tpu.memory_space<vmem>>, vector<64x1xf32>
      tpu.vector_store %arg7[%c0_30, %c0_31], %46 {strides = array<i32>} : memref<64x1xf32, #tpu.memory_space<vmem>>, vector<64x1xf32>,
    } else {
    }
    %c0 = arith.constant 0 : index
    %c0_1 = arith.constant 0 : index
    %3 = vector.load %arg2[%c0, %c0_1] : memref<64x160xf32, #tpu.memory_space<vmem>>, vector<64x160xf32>
    %c160_i32 = arith.constant 160 : i32
    %4 = arith.muli %arg1, %c160_i32 : i32
    %5 = tpu.iota {dimensions = array<i32: 1>} : vector<64x160xi32>
    %6 = vector.broadcast %4 : i32 to vector<64x160xi32>
    %7 = arith.addi %6, %5 : vector<64x160xi32>
    %c160_i32_2 = arith.constant 160 : i32
    %8 = vector.broadcast %c160_i32_2 : i32 to vector<64x160xi32>
    %9 = arith.cmpi slt, %7, %8 : vector<64x160xi32>
    %cst = arith.constant 0xFF800000 : f32
    %10 = vector.broadcast %cst : f32 to vector<64x160xf32>
    %11 = arith.select %9, %3, %10 : vector<64x160xi1>, vector<64x160xf32>
    %c0_3 = arith.constant 0 : index
    %c0_4 = arith.constant 0 : index
    %12 = vector.load %arg5[%c0_3, %c0_4] : memref<64x1xf32, #tpu.memory_space<vmem>>, vector<64x1xf32>
    %cst_5 = arith.constant dense<0xFF800000> : vector<64xf32>
    %13 = vector.multi_reduction <maximumf>, %11, %cst_5 [1] : vector<64x160xf32> to vector<64xf32>
    %14 = vector.shape_cast %13 : vector<64xf32> to vector<64x1xf32>
    %15 = arith.maximumf %12, %14 : vector<64x1xf32>
    %16 = arith.subf %12, %15 : vector<64x1xf32>
    %17 = math.exp %16 : vector<64x1xf32>
    %c0_6 = arith.constant 0 : index
    %c0_7 = arith.constant 0 : index
    %18 = vector.load %arg6[%c0_6, %c0_7] : memref<64x1xf32, #tpu.memory_space<vmem>>, vector<64x1xf32>
    %19 = arith.mulf %17, %18 : vector<64x1xf32>
    %20 = vector.broadcast %15 : vector<64x1xf32> to vector<64x160xf32>
    %21 = arith.subf %11, %20 : vector<64x160xf32>
    %22 = math.exp %21 : vector<64x160xf32>
    %cst_8 = arith.constant dense<0.000000e+00> : vector<64xf32>
    %23 = vector.multi_reduction <add>, %22, %cst_8 [1] : vector<64x160xf32> to vector<64xf32>
    %24 = vector.shape_cast %23 : vector<64xf32> to vector<64x1xf32>
    %25 = arith.addf %19, %24 : vector<64x1xf32>
    %c0_9 = arith.constant 0 : index
    %c0_10 = arith.constant 0 : index
    %26 = vector.load %arg6[%c0_9, %c0_10] : memref<64x1xf32, #tpu.memory_space<vmem>>, vector<64x1xf32>
    tpu.vector_store %arg6[%c0_9, %c0_10], %25 {strides = array<i32>} : memref<64x1xf32, #tpu.memory_space<vmem>>, vector<64x1xf32>,
    %c0_11 = arith.constant 0 : index
    %c0_12 = arith.constant 0 : index
    %27 = vector.load %arg5[%c0_11, %c0_12] : memref<64x1xf32, #tpu.memory_space<vmem>>, vector<64x1xf32>
    tpu.vector_store %arg5[%c0_11, %c0_12], %15 {strides = array<i32>} : memref<64x1xf32, #tpu.memory_space<vmem>>, vector<64x1xf32>,
    %c0_13 = arith.constant 0 : index
    %c0_14 = arith.constant 0 : index
    %28 = vector.load %arg3[%c0_13, %c0_14] : memref<64x1xi32, #tpu.memory_space<vmem>>, vector<64x1xi32>
    %29 = vector.broadcast %28 : vector<64x1xi32> to vector<64x160xi32>
    %30 = arith.cmpi eq, %7, %29 : vector<64x160xi32>
    %31 = arith.andi %30, %9 : vector<64x160xi1>
    %c0_15 = arith.constant 0 : index
    %c0_16 = arith.constant 0 : index
    %32 = vector.load %arg7[%c0_15, %c0_16] : memref<64x1xf32, #tpu.memory_space<vmem>>, vector<64x1xf32>
    %cst_17 = arith.constant 0.000000e+00 : f32
    %33 = vector.broadcast %cst_17 : f32 to vector<64x160xf32>
    %34 = arith.select %31, %11, %33 : vector<64x160xi1>, vector<64x160xf32>
    %cst_18 = arith.constant dense<0.000000e+00> : vector<64xf32>
    %35 = vector.multi_reduction <add>, %34, %cst_18 [1] : vector<64x160xf32> to vector<64xf32>
    %36 = vector.shape_cast %35 : vector<64xf32> to vector<64x1xf32>
    %37 = arith.addf %32, %36 : vector<64x1xf32>
    %c0_19 = arith.constant 0 : index
    %c0_20 = arith.constant 0 : index
    %38 = vector.load %arg7[%c0_19, %c0_20] : memref<64x1xf32, #tpu.memory_space<vmem>>, vector<64x1xf32>
    tpu.vector_store %arg7[%c0_19, %c0_20], %37 {strides = array<i32>} : memref<64x1xf32, #tpu.memory_space<vmem>>, vector<64x1xf32>,
    %c0_i32_21 = arith.constant 0 : i32
    %39 = arith.cmpi eq, %arg1, %c0_i32_21 : i32
    %40 = arith.extui %39 : i1 to i32
    %c0_i32_22 = arith.constant 0 : i32
    %41 = arith.cmpi ne, %40, %c0_i32_22 : i32
    scf.if %41 {
      %c0_23 = arith.constant 0 : index
      %c0_24 = arith.constant 0 : index
      %42 = vector.load %arg6[%c0_23, %c0_24] : memref<64x1xf32, #tpu.memory_space<vmem>>, vector<64x1xf32>
      %43 = math.log %42 : vector<64x1xf32>
      %c0_25 = arith.constant 0 : index
      %c0_26 = arith.constant 0 : index
      %44 = vector.load %arg5[%c0_25, %c0_26] : memref<64x1xf32, #tpu.memory_space<vmem>>, vector<64x1xf32>
      %45 = arith.addf %43, %44 : vector<64x1xf32>
      %c0_27 = arith.constant 0 : index
      %c0_28 = arith.constant 0 : index
      %46 = vector.load %arg7[%c0_27, %c0_28] : memref<64x1xf32, #tpu.memory_space<vmem>>, vector<64x1xf32>
      %47 = arith.subf %45, %46 : vector<64x1xf32>
      %c64_i32 = arith.constant 64 : i32
      %48 = arith.muli %arg0, %c64_i32 : i32
      %49 = tpu.iota {dimensions = array<i32: 0>} : vector<64x1xi32>
      %50 = vector.broadcast %48 : i32 to vector<64x1xi32>
      %51 = arith.addi %50, %49 : vector<64x1xi32>
      %c64_i32_29 = arith.constant 64 : i32
      %52 = vector.broadcast %c64_i32_29 : i32 to vector<64x1xi32>
      %53 = arith.cmpi slt, %51, %52 : vector<64x1xi32>
      %c-100_i32 = arith.constant -100 : i32
      %54 = vector.broadcast %c-100_i32 : i32 to vector<64x1xi32>
      %55 = arith.cmpi ne, %28, %54 : vector<64x1xi32>
      %56 = arith.andi %53, %55 : vector<64x1xi1>
      %cst_30 = arith.constant 0.000000e+00 : f32
      %57 = vector.broadcast %cst_30 : f32 to vector<64x1xf32>
      %58 = arith.select %56, %47, %57 : vector<64x1xi1>, vector<64x1xf32>
      %59 = vector.shape_cast %58 : vector<64x1xf32> to vector<1x64x1xf32>
      %cst_31 = arith.constant dense<0.000000e+00> : vector<1xf32>
      %60 = vector.multi_reduction <add>, %59, %cst_31 [1, 2] : vector<1x64x1xf32> to vector<1xf32>
      %61 = vector.shape_cast %60 : vector<1xf32> to vector<1x1x1xf32>
      %62 = vector.extract %61[0, 0, 0] : f32 from vector<1x1x1xf32>
      %c0_32 = arith.constant 0 : index
      %c0_33 = arith.constant 0 : index
      %63 = memref.load %arg4[%c0_32, %c0_33] : memref<1x2xf32, #tpu.memory_space<smem>>
      memref.store %62, %arg4[%c0_32, %c0_33] : memref<1x2xf32, #tpu.memory_space<smem>>
      %64 = arith.extui %56 : vector<64x1xi1> to vector<64x1xi32>
      %65 = arith.sitofp %64 : vector<64x1xi32> to vector<64x1xf32>
      %66 = vector.shape_cast %65 : vector<64x1xf32> to vector<1x64x1xf32>
      %cst_34 = arith.constant dense<0.000000e+00> : vector<1xf32>
      %67 = vector.multi_reduction <add>, %66, %cst_34 [1, 2] : vector<1x64x1xf32> to vector<1xf32>
      %68 = vector.shape_cast %67 : vector<1xf32> to vector<1x1x1xf32>
      %69 = vector.extract %68[0, 0, 0] : f32 from vector<1x1x1xf32>
      %c0_35 = arith.constant 0 : index
      %c1 = arith.constant 1 : index
      %70 = memref.load %arg4[%c0_35, %c1] : memref<1x2xf32, #tpu.memory_space<smem>>
      memref.store %69, %arg4[%c0_35, %c1] : memref<1x2xf32, #tpu.memory_space<smem>>
    } else {
    }
    return
  }
  func.func @transform_0(%arg0: i32, %arg1: i32) -> (i32, i32) {
    %c0_i32 = arith.constant 0 : i32
    return %arg0, %arg1 : i32, i32
  }
  func.func @transform_1(%arg0: i32, %arg1: i32) -> (i32, i32) {
    %c0_i32 = arith.constant 0 : i32
    %c0_i32_0 = arith.constant 0 : i32
    return %arg0, %c0_i32 : i32, i32
  }
  func.func @transform_2(%arg0: i32, %arg1: i32) -> (i32, i32) {
    %c0_i32 = arith.constant 0 : i32
    %c0_i32_0 = arith.constant 0 : i32
    return %arg0, %c0_i32 : i32, i32
  }
}

</mosaic_0001>

<bundles_post_ra>
// kernel: tpu_custom_call.1
= control target key start
LH: loop header
LB: loop body
LE: loop exit
PB: predicated region body
PF: predicated region fallthrough
CT: control target
= control target key end

     0   :  { %7 = vsyncpa [#allocation6], 0  ;;  %s1307_s0 = inlined_call_operand.hbm [shape: f32[64,160], index: 0, kind: input, shape index: {}]   ;;  %s1308_s1 = inlined_call_operand.vmem [shape: s32[64,1], index: 1, kind: input, shape index: {}]   ;;  %s1309_s2 = inlined_call_operand.hbm [shape: f32[1,2], index: 2, kind: output, shape index: {}]  }
   0x1   :  { %8 = vsyncpa [#allocation7], 0  ;;  %s779_s9 = smov [#allocation5]   ;;  %s743_s13 = scalar_lea.hbm %s1307_s0, 2048 }
   0x2   :  { %s14_s10 = sshll.u32 %s779_s9, 4  ;;  %p744_p0 = scmp.ne.s32.totalorder %s1307_s0, %s743_s13  ;;  %s15_s10 = int_to_ptr.vmem [resolvable:$true] %s14_s10 }
   0x3   :  { %p747_p1 = scmp.lt.u32.totalorder %s743_s13, %s1307_s0 }
   0x5   :  { %p749_p2 = pnand %p747_p1, %p744_p0 }
   0x7   :  { %752 = shalt.err (!%p749_p2)
}
   0x8   :  { %s753_s18 = scalar_lea.vmem %s15_s10, 2048  ;;  %p758_p4 = scmp.lt.s32.totalorder %s15_s10, %s15_s10 }
   0x9   :  { %p754_p3 = scmp.ne.s32.totalorder %s15_s10, %s753_s18  ;;  %p759_p5 = scmp.lt.s32.totalorder %s753_s18, %s753_s18 }
   0xb   :  { %p760_p6 = por %p759_p5, %p758_p4 }
   0xd   :  { %p761_p7 = pnand %p760_p6, %p754_p3 }
   0xf   :  { %764 = shalt.err (!%p761_p7)
}
  0x10   :  { %s780_s19 = smov 256   ;;  %s781_s20 = smov 16  }
  0x11   :  { %20 = dma.hbm_to_vmem [thread:$0]  %s1307_s0, 2048, %s15_s10, [#allocation6], %s780_s19, %s780_s19, %s781_s20  }
  0x12   :  { %775 = dma.done.wait [#allocation6], 2048  }
  0x13   :  { %776 = vsyncadd [#allocation6], 4294965248  ;;  %v72_v0 = vlaneseq  ;;  %vm30_vm0 = vcmask 7168   ;;  %v782_v1 = vmov -inf   ;;  %vm104_vm2 = vcmask 261120   ;;  %v827_v4 = vld [vmem:[#allocation5] sm:$0xff] }
  0x14   :  { %31 = vst.msk [vmem:[#allocation2] sm:$0xff] %vm30_vm0, %v782_v1  ;;  %32 = vst.msk [vmem:[#allocation2 + $0x8] sm:$0xff] %vm30_vm0, %v782_v1  ;;  %v56_v5 = vld [vmem:[#allocation5 + $0x8] sm:$0xff]  ;;  %v58_v7 = vld [vmem:[#allocation5 + $0x18] sm:$0xff]  ;;  %v783_v44 = vmov 0   ;;  %v784_v45 = vmov 0.0  }
  0x15   :  { %33 = vst.msk [vmem:[#allocation2 + $0x10] sm:$0xff] %vm30_vm0, %v782_v1  ;;  %34 = vst.msk [vmem:[#allocation2 + $0x18] sm:$0xff] %vm30_vm0, %v782_v1  ;;  %v821_v2 = vand.u32 127, %v72_v0  ;;  %v833_v8 = vld [vmem:[#allocation5 + $0x20] sm:$0xff]  ;;  %v60_v9 = vld [vmem:[#allocation5 + $0x28] sm:$0xff]  ;;  %677 = vset.pattern.permute.xlu0 %v783_v44  ;;  %678 = vset.pattern.permute.xlu1 %v783_v44  ;;  %s765_s13 = scalar_lea.hbm %s1309_s2, 16 }
  0x16   :  { %35 = vst.msk [vmem:[#allocation2 + $0x20] sm:$0xff] %vm30_vm0, %v782_v1  ;;  %36 = vst.msk [vmem:[#allocation2 + $0x28] sm:$0xff] %vm30_vm0, %v782_v1  ;;  %v837_v11 = vld [vmem:[#allocation5 + $0x10] sm:$0xff]  ;;  %v62_v14 = vld [vmem:[#allocation5 + $0x38] sm:$0xff]  ;;  %p766_p8 = scmp.ne.s32.totalorder %s1309_s2, %s765_s13  ;;  %p769_p9 = scmp.lt.u32.totalorder %s765_s13, %s1309_s2 }
  0x17   :  { %37 = vst.msk [vmem:[#allocation2 + $0x30] sm:$0xff] %vm30_vm0, %v782_v1  ;;  %38 = vst.msk [vmem:[#allocation2 + $0x38] sm:$0xff] %vm30_vm0, %v782_v1  ;;  %v824_v3 = vadd.s32 128, %v821_v2  ;;  %v852_v18 = vld [vmem:[#allocation5 + $0x30] sm:$0xff]  ;;  %v64_v20 = vld [vmem:[#allocation5 + $0x48] sm:$0xff] }
  0x18   :  { %v66_v21 = vld [vmem:[#allocation5 + $0x58] sm:$0xff]  ;;  %v68_v25 = vld [vmem:[#allocation5 + $0x68] sm:$0xff]  ;;  %v871_v30 = vld [vmem:[#allocation5 + $0x40] sm:$0xff]  ;;  %39 = vst.msk [vmem:[#allocation3] sm:$0xff] %vm30_vm0, %v784_v45  ;;  %p771_p10 = pnand %p769_p9, %p766_p8 }
  0x19   :  { %vm79_vm1 = vcmp.lt.s32.totalorder %v824_v3, 160  ;;  %v70_v28 = vld [vmem:[#allocation5 + $0x78] sm:$0xff]  ;;  %v875_v32 = vld [vmem:[#allocation5 + $0x50] sm:$0xff]  ;;  %v889_v38 = vld [vmem:[#allocation5 + $0x60] sm:$0xff]  ;;  %40 = vst.msk [vmem:[#allocation3 + $0x8] sm:$0xff] %vm30_vm0, %v784_v45 }
  0x1a   :  { %v831_v6 = vsel %vm79_vm1, %v56_v5, -inf  ;;  %v841_v12 = vsel %vm79_vm1, %v58_v7, -inf  ;;  %v845_v13 = vsel %vm79_vm1, %v60_v9, -inf  ;;  %v856_v19 = vsel %vm79_vm1, %v62_v14, -inf  ;;  %v893_v40 = vld [vmem:[#allocation5 + $0x70] sm:$0xff]  ;;  %41 = vst.msk [vmem:[#allocation3 + $0x10] sm:$0xff] %vm30_vm0, %v784_v45 }
  0x1b   :  { %v105_v10 = vsel %vm104_vm2, %v831_v6, -inf  ;;  %v109_v16 = vsel %vm104_vm2, %v841_v12, -inf  ;;  %v113_v17 = vsel %vm104_vm2, %v845_v13, -inf  ;;  %v117_v23 = vsel %vm104_vm2, %v856_v19, -inf  ;;  %42 = vst.msk [vmem:[#allocation3 + $0x18] sm:$0xff] %vm30_vm0, %v784_v45  ;;  %43 = vst.msk [vmem:[#allocation3 + $0x20] sm:$0xff] %vm30_vm0, %v784_v45 }
  0x1c   :  { %v106_v15 = vmax.f32 %v827_v4, %v105_v10  ;;  %v114_v22 = vmax.f32 %v833_v8, %v113_v17  ;;  %v863_v24 = vsel %vm79_vm1, %v64_v20, -inf  ;;  %v110_v26 = vmax.f32 %v837_v11, %v109_v16  ;;  %44 = vst.msk [vmem:[#allocation3 + $0x28] sm:$0xff] %vm30_vm0, %v784_v45  ;;  %45 = vst.msk [vmem:[#allocation3 + $0x30] sm:$0xff] %vm30_vm0, %v784_v45  ;;  %v931_v46 = vld [vmem:[#allocation2] sm:$0xff]  ;;  %v933_v47 = vld [vmem:[#allocation2 + $0x10] sm:$0xff] }
  0x1d   :  { %v868_v27 = vsel %vm79_vm1, %v66_v21, -inf  ;;  %v118_v29 = vmax.f32 %v852_v18, %v117_v23  ;;  %v121_v31 = vsel %vm104_vm2, %v863_v24, -inf  ;;  %v881_v34 = vsel %vm79_vm1, %v68_v25, -inf  ;;  %46 = vst.msk [vmem:[#allocation3 + $0x38] sm:$0xff] %vm30_vm0, %v784_v45  ;;  %47 = vst.msk [vmem:[#allocation4] sm:$0xff] %vm30_vm0, %v784_v45  ;;  %v938_v51 = vld [vmem:[#allocation2 + $0x8] sm:$0xff] }
  0x1e   :  { %107 = vmax.xlane.f32.xlu0 %v106_v15  ;;  %115 = vmax.xlane.f32.xlu1 %v114_v22  ;;  %v125_v33 = vsel %vm104_vm2, %v868_v27, -inf  ;;  %v885_v35 = vsel %vm79_vm1, %v70_v28, -inf  ;;  %v122_v36 = vmax.f32 %v871_v30, %v121_v31  ;;  %v129_v39 = vsel %vm104_vm2, %v881_v34, -inf  ;;  %48 = vst.msk [vmem:[#allocation4 + $0x8] sm:$0xff] %vm30_vm0, %v784_v45  ;;  %49 = vst.msk [vmem:[#allocation4 + $0x10] sm:$0xff] %vm30_vm0, %v784_v45  ;;  %v948_v54 = vld [vmem:[#allocation2 + $0x18] sm:$0xff] }
  0x1f   :  { %v126_v37 = vmax.f32 %v875_v32, %v125_v33  ;;  %v133_v41 = vsel %vm104_vm2, %v885_v35, -inf  ;;  %v130_v42 = vmax.f32 %v889_v38, %v129_v39  ;;  %50 = vst.msk [vmem:[#allocation4 + $0x18] sm:$0xff] %vm30_vm0, %v784_v45  ;;  %51 = vst.msk [vmem:[#allocation4 + $0x20] sm:$0xff] %vm30_vm0, %v784_v45  ;;  %v953_v56 = vld [vmem:[%s1308_s1 + $0x8] sm:$0xff]  ;;  %v965_v61 = vld [vmem:[#allocation2 + $0x20] sm:$0xff] }
  0x20   :  { %v134_v43 = vmax.f32 %v893_v40, %v133_v41  ;;  %52 = vst.msk [vmem:[#allocation4 + $0x28] sm:$0xff] %vm30_vm0, %v784_v45  ;;  %53 = vst.msk [vmem:[#allocation4 + $0x30] sm:$0xff] %vm30_vm0, %v784_v45  ;;  %v973_v63 = vld [vmem:[#allocation2 + $0x28] sm:$0xff]  ;;  %v978_v0 = vld [vmem:[%s1308_s1 + $0x18] sm:$0xff] }
  0x21   :  { %54 = vst.msk [vmem:[#allocation4 + $0x38] sm:$0xff] %vm30_vm0, %v784_v45  ;;  %v990_v14 = vld [vmem:[#allocation2 + $0x30] sm:$0xff]  ;;  %v998_v16 = vld [vmem:[#allocation2 + $0x38] sm:$0xff]  ;;  %v1003_v17 = vld [vmem:[%s1308_s1 + $0x28] sm:$0xff] }
  0x22   :  { %111 = vmax.xlane.f32.xlu0 %v110_v26  ;;  %119 = vmax.xlane.f32.xlu1 %v118_v29  ;;  %v1024_v28 = vld [vmem:[%s1308_s1 + $0x38] sm:$0xff]  ;;  %v1038_v31 = vld [vmem:[%s1308_s1] sm:$0xff]  ;;  %v1044_v33 = vld [vmem:[%s1308_s1 + $0x10] sm:$0xff] }
  0x26   :  { %123 = vmax.xlane.f32.xlu0 %v122_v36  ;;  %127 = vmax.xlane.f32.xlu1 %v126_v37  ;;  %v1050_v36 = vld [vmem:[%s1308_s1 + $0x20] sm:$0xff]  ;;  %v1056_v37 = vld [vmem:[%s1308_s1 + $0x30] sm:$0xff] }
  0x2a   :  { %131 = vmax.xlane.f32.xlu0 %v130_v42  ;;  %135 = vmax.xlane.f32.xlu1 %v134_v43 }
  0xab   :  { %v108_v48 = vpop.xlane.xlu0 %107  ;;  %v116_v50 = vpop.xlane.xlu1 %115 }
  0xac   :  { %v936_v49 = vmax.f32 %v931_v46, %v108_v48  ;;  %v941_v52 = vmax.f32 %v933_v47, %v116_v50 }
  0xae   :  { %v145_v53 = vsub.f32 %v931_v46, %v936_v49  ;;  %322 = vst.msk [vmem:[#allocation2] sm:$0xff] %vm30_vm0, %v936_v49  ;;  %187 = vperm.xlu0 %677, %v936_v49   ;;  %v147_v57 = vsub.f32 %v933_v47, %v941_v52  ;;  %324 = vst.msk [vmem:[#allocation2 + $0x10] sm:$0xff] %vm30_vm0, %v941_v52 }
  0xaf   :  { %v112_v55 = vpop.xlane.xlu0 %111  ;;  %v120_v59 = vpop.xlane.xlu1 %119 }
  0xb0   :  { %v960_v58 = vmax.f32 %v938_v51, %v112_v55  ;;  %v963_v60 = vmax.f32 %v948_v54, %v120_v59 }
  0xb2   :  { %v146_v62 = vsub.f32 %v938_v51, %v960_v58  ;;  %323 = vst.msk [vmem:[#allocation2 + $0x8] sm:$0xff] %vm30_vm0, %v960_v58  ;;  %192 = vperm.xlu1 %678, %v960_v58   ;;  %342 = vperm.xlu0 %677, %v953_v56   ;;  %325 = vst.msk [vmem:[#allocation2 + $0x18] sm:$0xff] %vm30_vm0, %v963_v60  ;;  %v170_v58 = vld [vmem:[#allocation3 + $0x8] sm:$0xff] }
  0xb3   :  { %v124_v5 = vpop.xlane.xlu0 %123  ;;  %v128_v9 = vpop.xlane.xlu1 %127 }
  0xb4   :  { %v985_v7 = vmax.f32 %v965_v61, %v124_v5  ;;  %v988_v10 = vmax.f32 %v973_v63, %v128_v9 }
  0xb6   :  { %197 = vperm.xlu1 %678, %v941_v52   ;;  %348 = vperm.xlu0 %677, %v978_v0   ;;  %326 = vst.msk [vmem:[#allocation2 + $0x20] sm:$0xff] %vm30_vm0, %v985_v7  ;;  %327 = vst.msk [vmem:[#allocation2 + $0x28] sm:$0xff] %vm30_vm0, %v988_v10  ;;  %v1327_v46 = vsub.f32 %v965_v61, %v985_v7  ;;  %v1328_v47 = vsub.f32 %v973_v63, %v988_v10  ;;  %v172_v63 = vld [vmem:[#allocation3 + $0x18] sm:$0xff] }
  0xb7   :  { %v132_v21 = vpop.xlane.xlu0 %131  ;;  %v136_v23 = vpop.xlane.xlu1 %135 }
  0xb8   :  { %v1010_v22 = vmax.f32 %v990_v14, %v132_v21  ;;  %v1013_v25 = vmax.f32 %v998_v16, %v136_v23  ;;  %v161_v49 = vmul.f32 1.442695, %v1327_v46  ;;  %v163_v52 = vmul.f32 1.442695, %v1328_v47  ;;  %v396_v46 = vld [vmem:[#allocation4 + $0x10] sm:$0xff] }
  0xba   :  { %202 = vperm.xlu1 %678, %v963_v60   ;;  %354 = vperm.xlu0 %677, %v1003_v17   ;;  %328 = vst.msk [vmem:[#allocation2 + $0x30] sm:$0xff] %vm30_vm0, %v1010_v22  ;;  %329 = vst.msk [vmem:[#allocation2 + $0x38] sm:$0xff] %vm30_vm0, %v1013_v25  ;;  %v1329_v61 = vsub.f32 %v990_v14, %v1010_v22 }
  0xbe   :  { %207 = vperm.xlu1 %678, %v985_v7   ;;  %360 = vperm.xlu0 %677, %v1024_v28   ;;  %v165_v7 = vmul.f32 1.442695, %v1329_v61 }
  0xc2   :  { %212 = vperm.xlu1 %678, %v988_v10  }
  0xc6   :  { %217 = vperm.xlu1 %678, %v1010_v22  }
  0xca   :  { %222 = vperm.xlu1 %678, %v1013_v25  }
  0xce   :  { %339 = vperm.xlu1 %678, %v1038_v31  }
  0xd2   :  { %345 = vperm.xlu1 %678, %v1044_v33  }
  0xd6   :  { %351 = vperm.xlu1 %678, %v1050_v36  }
  0xda   :  { %357 = vperm.xlu1 %678, %v1056_v37  }
 0x12d   :  { %v188_v39 = vpop.permute.xlu0 %187 }
 0x12e   :  { %v225_v41 = vsub.f32 %v827_v4, %v188_v39  ;;  %v226_v42 = vsub.f32 %v831_v6, %v188_v39 }
 0x130   :  { %v241_v43 = vmul.f32 1.442695, %v225_v41  ;;  %v243_v44 = vmul.f32 1.442695, %v226_v42 }
 0x131   :  { %v193_v48 = vpop.permute.xlu1 %192 }
 0x132   :  { %679 = vpow2.f32 %v241_v43  ;;  %v227_v50 = vsub.f32 %v837_v11, %v193_v48  ;;  %v228_v55 = vsub.f32 %v841_v12, %v193_v48 }
 0x133   :  { %681 = vpow2.f32 %v243_v44 }
 0x134   :  { %v245_v59 = vmul.f32 1.442695, %v227_v50  ;;  %v247_v5 = vmul.f32 1.442695, %v228_v55 }
 0x135   :  { %v198_v9 = vpop.permute.xlu1 %197 }
 0x136   :  { %683 = vpow2.f32 %v245_v59  ;;  %v229_v21 = vsub.f32 %v833_v8, %v198_v9  ;;  %v230_v23 = vsub.f32 %v845_v13, %v198_v9 }
 0x137   :  { %685 = vpow2.f32 %v247_v5 }
 0x138   :  { %v249_v29 = vmul.f32 1.442695, %v229_v21  ;;  %v251_v39 = vmul.f32 1.442695, %v230_v23 }
 0x139   :  { %v203_v41 = vpop.permute.xlu1 %202 }
 0x13a   :  { %687 = vpow2.f32 %v249_v29  ;;  %v231_v42 = vsub.f32 %v852_v18, %v203_v41  ;;  %v232_v43 = vsub.f32 %v856_v19, %v203_v41 }
 0x13b   :  { %689 = vpow2.f32 %v251_v39 }
 0x13c   :  { %v680_v48 = vpop.eup %679  ;;  %v253_v44 = vmul.f32 1.442695, %v231_v42  ;;  %v255_v50 = vmul.f32 1.442695, %v232_v43 }
 0x13d   :  { %v682_v55 = vpop.eup %681  ;;  %v208_v26 = vpop.permute.xlu1 %207 }
 0x13e   :  { %691 = vpow2.f32 %v253_v44  ;;  %v233_v59 = vsub.f32 %v871_v30, %v208_v26  ;;  %v234_v9 = vsub.f32 %v863_v24, %v208_v26  ;;  %v273_v5 = vsel %vm104_vm2, %v682_v55, 0.0 }
 0x13f   :  { %693 = vpow2.f32 %v255_v50  ;;  %v274_v20 = vadd.f32 %v680_v48, %v273_v5 }
 0x140   :  { %v684_v21 = vpop.eup %683  ;;  %v257_v29 = vmul.f32 1.442695, %v233_v59  ;;  %v259_v23 = vmul.f32 1.442695, %v234_v9 }
 0x141   :  { %v686_v15 = vpop.eup %685  ;;  %v213_v41 = vpop.permute.xlu1 %212  ;;  %275 = vadd.xlane.f32.xlu1 %v274_v20 }
 0x142   :  { %695 = vpow2.f32 %v257_v29  ;;  %v235_v39 = vsub.f32 %v875_v32, %v213_v41  ;;  %v236_v42 = vsub.f32 %v868_v27, %v213_v41  ;;  %v277_v43 = vsel %vm104_vm2, %v686_v15, 0.0 }
 0x143   :  { %697 = vpow2.f32 %v259_v23  ;;  %v278_v44 = vadd.f32 %v684_v21, %v277_v43 }
 0x144   :  { %v688_v26 = vpop.eup %687  ;;  %v261_v50 = vmul.f32 1.442695, %v235_v39  ;;  %v263_v1 = vmul.f32 1.442695, %v236_v42  ;;  %v343_v39 = vpop.permute.xlu0 %342 }
 0x145   :  { %v690_v55 = vpop.eup %689  ;;  %279 = vadd.xlane.f32.xlu0 %v278_v44  ;;  %v218_v59 = vpop.permute.xlu1 %217  ;;  %vm365_vm4 = vcmp.eq.s32.totalorder %v824_v3, %v343_v39  ;;  %vm364_vm12 = vcmp.eq.s32.totalorder %v821_v2, %v343_v39 }
 0x146   :  { %699 = vpow2.f32 %v261_v50  ;;  %v237_v48 = vsub.f32 %v889_v38, %v218_v59  ;;  %v238_v9 = vsub.f32 %v881_v34, %v218_v59  ;;  %v281_v20 = vsel %vm104_vm2, %v690_v55, 0.0  ;;  %vm1092_vm7 = vmand %vm365_vm4, %vm79_vm1 }
 0x147   :  { %701 = vpow2.f32 %v263_v1  ;;  %v282_v5 = vadd.f32 %v688_v26, %v281_v20 }
 0x148   :  { %v692_v29 = vpop.eup %691  ;;  %v265_v41 = vmul.f32 1.442695, %v237_v48  ;;  %v267_v15 = vmul.f32 1.442695, %v238_v9 }
 0x149   :  { %v694_v23 = vpop.eup %693  ;;  %283 = vadd.xlane.f32.xlu0 %v282_v5  ;;  %v223_v21 = vpop.permute.xlu1 %222 }
 0x14a   :  { %703 = vpow2.f32 %v265_v41  ;;  %v239_v42 = vsub.f32 %v893_v40, %v223_v21  ;;  %v240_v43 = vsub.f32 %v885_v35, %v223_v21  ;;  %v285_v44 = vsel %vm104_vm2, %v694_v23, 0.0  ;;  %v349_v41 = vpop.permute.xlu0 %348 }
 0x14b   :  { %705 = vpow2.f32 %v267_v15  ;;  %v286_v50 = vadd.f32 %v692_v29, %v285_v44  ;;  %vm369_vm8 = vcmp.eq.s32.totalorder %v824_v3, %v349_v41 }
 0x14c   :  { %v696_v59 = vpop.eup %695  ;;  %v269_v55 = vmul.f32 1.442695, %v239_v42  ;;  %v271_v1 = vmul.f32 1.442695, %v240_v43  ;;  %vm1113_vm13 = vmand %vm369_vm8, %vm79_vm1 }
 0x14d   :  { %v698_v26 = vpop.eup %697  ;;  %287 = vadd.xlane.f32.xlu1 %v286_v50  ;;  %v340_v48 = vpop.permute.xlu1 %339 }
 0x14e   :  { %707 = vpow2.f32 %v269_v55  ;;  %v289_v9 = vsel %vm104_vm2, %v698_v26, 0.0  ;;  %vm363_vm3 = vcmp.eq.s32.totalorder %v824_v3, %v340_v48  ;;  %vm362_vm10 = vcmp.eq.s32.totalorder %v821_v2, %v340_v48 }
 0x14f   :  { %709 = vpow2.f32 %v271_v1  ;;  %v290_v20 = vadd.f32 %v696_v59, %v289_v9  ;;  %vm1084_vm5 = vmand %vm363_vm3, %vm79_vm1  ;;  %v355_v1 = vpop.permute.xlu0 %354 }
 0x150   :  { %v700_v5 = vpop.eup %699  ;;  %v403_v55 = vsel %vm1084_vm5, %v831_v6, 0.0  ;;  %vm373_vm14 = vcmp.eq.s32.totalorder %v824_v3, %v355_v1  ;;  %vm368_vm5 = vcmp.eq.s32.totalorder %v821_v2, %v349_v41 }
 0x151   :  { %v702_v21 = vpop.eup %701  ;;  %291 = vadd.xlane.f32.xlu0 %v290_v20  ;;  %v346_v23 = vpop.permute.xlu1 %345 }
 0x152   :  { %v293_v15 = vsel %vm104_vm2, %v702_v21, 0.0  ;;  %vm367_vm6 = vcmp.eq.s32.totalorder %v824_v3, %v346_v23  ;;  %v418_v21 = vsel %vm104_vm2, %v403_v55, 0.0  ;;  %vm366_vm3 = vcmp.eq.s32.totalorder %v821_v2, %v346_v23 }
 0x153   :  { %v294_v42 = vadd.f32 %v700_v5, %v293_v15  ;;  %vm1102_vm9 = vmand %vm367_vm6, %vm79_vm1  ;;  %v361_v50 = vpop.permute.xlu0 %360  ;;  %v406_v41 = vsel %vm366_vm3, %v833_v8, 0.0  ;;  %vm555_vm3 = vcmp.ne.s32.totalorder %v978_v0, 4294967196 }
 0x154   :  { %v704_v43 = vpop.eup %703  ;;  %v407_v48 = vsel %vm1102_vm9, %v845_v13, 0.0  ;;  %vm1142_vm6 = vmand %vm373_vm14, %vm79_vm1  ;;  %vm377_vm8 = vcmp.eq.s32.totalorder %v824_v3, %v361_v50  ;;  %vm552_vm14 = vcmp.ne.s32.totalorder %v1038_v31, 4294967196 }
 0x155   :  { %v706_v44 = vpop.eup %705  ;;  %295 = vadd.xlane.f32.xlu1 %v294_v42  ;;  %v352_v59 = vpop.permute.xlu1 %351  ;;  %v405_v42 = vsel %vm1092_vm7, %v841_v12, 0.0  ;;  %v426_v12 = vsel %vm104_vm2, %v407_v48, 0.0  ;;  %v413_v23 = vsel %vm1142_vm6, %v868_v27, 0.0  ;;  %vm559_vm6 = vcmp.ne.s32.totalorder %v1024_v28, 4294967196 }
 0x156   :  { %v297_v9 = vsel %vm104_vm2, %v706_v44, 0.0  ;;  %vm371_vm11 = vcmp.eq.s32.totalorder %v824_v3, %v352_v59  ;;  %v402_v44 = vsel %vm362_vm10, %v827_v4, 0.0  ;;  %vm370_vm9 = vcmp.eq.s32.totalorder %v821_v2, %v352_v59 }
 0x157   :  { %v298_v20 = vadd.f32 %v704_v43, %v297_v9  ;;  %vm1126_vm15 = vmand %vm371_vm11, %vm79_vm1  ;;  %v419_v13 = vadd.f32 %v418_v21, %v402_v44  ;;  %v404_v9 = vsel %vm364_vm12, %v837_v11, 0.0  ;;  %v409_v11 = vsel %vm1113_vm13, %v856_v19, 0.0 }
 0x158   :  { %v708_v5 = vpop.eup %707  ;;  %v427_v21 = vadd.f32 %v426_v12, %v406_v41  ;;  %v408_v19 = vsel %vm368_vm5, %v852_v18, 0.0  ;;  %v430_v29 = vsel %vm104_vm2, %v409_v11, 0.0  ;;  %vm372_vm10 = vcmp.eq.s32.totalorder %v821_v2, %v355_v1  ;;  %vm1175_vm11 = vmand %vm377_vm8, %vm79_vm1 }
 0x159   :  { %v710_v6 = vpop.eup %709  ;;  %299 = vadd.xlane.f32.xlu0 %v298_v20  ;;  %v358_v15 = vpop.permute.xlu1 %357  ;;  %v422_v20 = vsel %vm104_vm2, %v405_v42, 0.0  ;;  %v410_v18 = vsel %vm370_vm9, %v871_v30, 0.0  ;;  %vm553_vm12 = vcmp.ne.s32.totalorder %v953_v56, 4294967196  ;;  %v431_v48 = vadd.f32 %v430_v29, %v408_v19 }
 0x15a   :  { %v301_v55 = vsel %vm104_vm2, %v710_v6, 0.0  ;;  %vm375_vm4 = vcmp.eq.s32.totalorder %v824_v3, %v358_v15  ;;  %vm374_vm13 = vcmp.eq.s32.totalorder %v821_v2, %v358_v15  ;;  %v412_v27 = vsel %vm372_vm10, %v875_v32, 0.0 }
 0x15b   :  { %v302_v26 = vadd.f32 %v708_v5, %v301_v55  ;;  %v411_v5 = vsel %vm1126_vm15, %v863_v24, 0.0  ;;  %vm1154_vm7 = vmand %vm375_vm4, %vm79_vm1  ;;  %v423_v24 = vadd.f32 %v422_v20, %v404_v9  ;;  %v438_v3 = vsel %vm104_vm2, %v413_v23, 0.0 }
 0x15c   :  { %v434_v6 = vsel %vm104_vm2, %v411_v5, 0.0  ;;  %v415_v8 = vsel %vm1154_vm7, %v881_v34, 0.0  ;;  %v417_v30 = vsel %vm1175_vm11, %v885_v35, 0.0  ;;  %v659_v15 = vsel %vm553_vm12, 1.0, %v784_v45 }
 0x15d   :  { %420 = vadd.xlane.f32.xlu0 %v419_v13  ;;  %303 = vadd.xlane.f32.xlu1 %v302_v26  ;;  %v435_v1 = vadd.f32 %v434_v6, %v410_v18  ;;  %v442_v34 = vsel %vm104_vm2, %v415_v8, 0.0  ;;  %v414_v42 = vsel %vm374_vm13, %v889_v38, 0.0  ;;  %v658_v43 = vsel %vm552_vm14, 1.0, %v784_v45 }
 0x15e   :  { %vm376_vm1 = vcmp.eq.s32.totalorder %v821_v2, %v361_v50  ;;  %v443_v32 = vadd.f32 %v442_v34, %v414_v42  ;;  %v439_v44 = vadd.f32 %v438_v3, %v412_v27  ;;  %vm554_vm15 = vcmp.ne.s32.totalorder %v1044_v33, 4294967196  ;;  %v169_v3 = vld [vmem:[#allocation3] sm:$0xff] }
 0x15f   :  { %v446_v55 = vsel %vm104_vm2, %v417_v30, 0.0  ;;  %v619_v35 = vsel %vm30_vm0, %v659_v15, 0.0  ;;  %v618_v13 = vsel %vm30_vm0, %v658_v43, 0.0  ;;  %v416_v38 = vsel %vm376_vm1, %v893_v40, 0.0  ;;  %v171_v15 = vld [vmem:[#allocation3 + $0x10] sm:$0xff] }
 0x160   :  { %v660_v26 = vsel %vm554_vm15, 1.0, %v784_v45  ;;  %v447_v12 = vadd.f32 %v446_v55, %v416_v38  ;;  %v620_v2 = vadd.f32 %v619_v35, %v618_v13  ;;  %v661_v9 = vsel %vm555_vm3, 1.0, %v784_v45 }
 0x161   :  { %428 = vadd.xlane.f32.xlu0 %v427_v21  ;;  %424 = vadd.xlane.f32.xlu1 %v423_v24  ;;  %v621_v50 = vsel %vm30_vm0, %v660_v26, 0.0  ;;  %vm556_vm2 = vcmp.ne.s32.totalorder %v1050_v36, 4294967196  ;;  %v623_v40 = vsel %vm30_vm0, %v661_v9, 0.0  ;;  %vm557_vm4 = vcmp.ne.s32.totalorder %v1003_v17, 4294967196  ;;  %v174_v9 = vld [vmem:[#allocation3 + $0x28] sm:$0xff] }
 0x162   :  { %v622_v20 = vadd.f32 %v621_v50, %v620_v2  ;;  %v662_v4 = vsel %vm556_vm2, 1.0, %v784_v45  ;;  %v663_v39 = vsel %vm557_vm4, 1.0, %v784_v45  ;;  %vm558_vm5 = vcmp.ne.s32.totalorder %v1056_v37, 4294967196 }
 0x163   :  { %v625_v11 = vsel %vm30_vm0, %v662_v4, 0.0  ;;  %v627_v21 = vsel %vm30_vm0, %v663_v39, 0.0  ;;  %v664_v24 = vsel %vm558_vm5, 1.0, %v784_v45  ;;  %v665_v6 = vsel %vm559_vm6, 1.0, %v784_v45 }
 0x164   :  { %v624_v5 = vadd.f32 %v623_v40, %v622_v20  ;;  %v629_v29 = vsel %vm30_vm0, %v664_v24, 0.0  ;;  %v631_v8 = vsel %vm30_vm0, %v665_v6, 0.0  ;;  %v153_v18 = vmul.f32 1.442695, %v145_v53 }
 0x165   :  { %436 = vadd.xlane.f32.xlu0 %v435_v1  ;;  %432 = vadd.xlane.f32.xlu1 %v431_v48  ;;  %v155_v1 = vmul.f32 1.442695, %v146_v62  ;;  %v157_v45 = vmul.f32 1.442695, %v147_v57  ;;  %v1326_v48 = vsub.f32 %v948_v54, %v963_v60  ;;  %v1330_v55 = vsub.f32 %v998_v16, %v1013_v25 }
 0x166   :  { %v626_v41 = vadd.f32 %v625_v11, %v624_v5  ;;  %711 = vpow2.f32 %v153_v18  ;;  %v175_v5 = vld [vmem:[#allocation3 + $0x30] sm:$0xff] }
 0x167   :  { %713 = vpow2.f32 %v155_v1  ;;  %v159_v34 = vmul.f32 1.442695, %v1326_v48  ;;  %v167_v35 = vmul.f32 1.442695, %v1330_v55 }
 0x168   :  { %v628_v19 = vadd.f32 %v627_v21, %v626_v41  ;;  %715 = vpow2.f32 %v157_v45 }
 0x169   :  { %444 = vadd.xlane.f32.xlu0 %v443_v32  ;;  %440 = vadd.xlane.f32.xlu1 %v439_v44  ;;  %717 = vpow2.f32 %v159_v34 }
 0x16a   :  { %v630_v23 = vadd.f32 %v629_v29, %v628_v19  ;;  %719 = vpow2.f32 %v161_v49  ;;  %v176_v29 = vld [vmem:[#allocation3 + $0x38] sm:$0xff] }
 0x16b   :  { %721 = vpow2.f32 %v163_v52 }
 0x16c   :  { %v632_v59 = vadd.f32 %v631_v8, %v630_v23  ;;  %723 = vpow2.f32 %v165_v7  ;;  %v394_v23 = vld [vmem:[#allocation4] sm:$0xff] }
 0x16d   :  { %448 = vadd.xlane.f32.xlu1 %v447_v12  ;;  %v173_v12 = vld [vmem:[#allocation3 + $0x20] sm:$0xff]  ;;  %725 = vpow2.f32 %v167_v35 }
 0x170   :  { %v712_v27 = vpop.eup %711 }
 0x171   :  { %633 = vadd.xlane.f32.xlu1 %v632_v59  ;;  %v714_v51 = vpop.eup %713  ;;  %v177_v53 = vmul.f32 %v712_v27, %v169_v3  ;;  %v395_v3 = vld [vmem:[#allocation4 + $0x8] sm:$0xff] }
 0x172   :  { %v178_v30 = vmul.f32 %v714_v51, %v170_v58  ;;  %v716_v54 = vpop.eup %715 }
 0x173   :  { %v179_v43 = vmul.f32 %v716_v54, %v171_v15  ;;  %v718_v32 = vpop.eup %717  ;;  %v398_v54 = vld [vmem:[#allocation4 + $0x20] sm:$0xff] }
 0x174   :  { %v180_v13 = vmul.f32 %v718_v32, %v172_v63  ;;  %v720_v38 = vpop.eup %719  ;;  %v493_v15 = vld [vmem:[#allocation2] sm:$0xff] }
 0x175   :  { %v181_v22 = vmul.f32 %v720_v38, %v173_v12  ;;  %v722_v2 = vpop.eup %721 }
 0x176   :  { %v182_v16 = vmul.f32 %v722_v2, %v174_v9  ;;  %v724_v25 = vpop.eup %723  ;;  %v494_v9 = vld [vmem:[#allocation2 + $0x8] sm:$0xff] }
 0x177   :  { %v183_v21 = vmul.f32 %v724_v25, %v175_v5  ;;  %v726_v6 = vpop.eup %725 }
 0x178   :  { %v184_v18 = vmul.f32 %v726_v6, %v176_v29 }
 0x1ce   :  { %v276_v62 = vpop.xlane.xlu1 %275 }
 0x1cf   :  { %v305_v57 = vadd.f32 %v276_v62, %v177_v53 }
 0x1d1   :  { %314 = vst.msk [vmem:[#allocation3] sm:$0xff] %vm30_vm0, %v305_v57 }
 0x1d2   :  { %v280_v60 = vpop.xlane.xlu0 %279 }
 0x1d3   :  { %v306_v42 = vadd.f32 %v280_v60, %v178_v30  ;;  %v397_v30 = vld [vmem:[#allocation4 + $0x18] sm:$0xff] }
 0x1d5   :  { %315 = vst.msk [vmem:[#allocation3 + $0x8] sm:$0xff] %vm30_vm0, %v306_v42 }
 0x1d6   :  { %v284_v44 = vpop.xlane.xlu0 %283 }
 0x1d7   :  { %v307_v10 = vadd.f32 %v284_v44, %v179_v43 }
 0x1d8   :  { %v469_v20 = vld [vmem:[#allocation3] sm:$0xff] }
 0x1d9   :  { %316 = vst.msk [vmem:[#allocation3 + $0x10] sm:$0xff] %vm30_vm0, %v307_v10  ;;  %727 = vlog2.f32 %v469_v20  ;;  %v399_v10 = vld [vmem:[#allocation4 + $0x28] sm:$0xff]  ;;  %v495_v20 = vld [vmem:[#allocation2 + $0x10] sm:$0xff] }
 0x1da   :  { %v288_v26 = vpop.xlane.xlu1 %287 }
 0x1db   :  { %v308_v14 = vadd.f32 %v288_v26, %v180_v13  ;;  %v400_v13 = vld [vmem:[#allocation4 + $0x30] sm:$0xff] }
 0x1dc   :  { %v470_v11 = vld [vmem:[#allocation3 + $0x8] sm:$0xff] }
 0x1dd   :  { %317 = vst.msk [vmem:[#allocation3 + $0x18] sm:$0xff] %vm30_vm0, %v308_v14  ;;  %729 = vlog2.f32 %v470_v11  ;;  %v401_v11 = vld [vmem:[#allocation4 + $0x38] sm:$0xff] }
 0x1de   :  { %v292_v50 = vpop.xlane.xlu0 %291 }
 0x1df   :  { %v309_v40 = vadd.f32 %v292_v50, %v181_v22 }
 0x1e0   :  { %v471_v41 = vld [vmem:[#allocation3 + $0x10] sm:$0xff] }
 0x1e1   :  { %318 = vst.msk [vmem:[#allocation3 + $0x20] sm:$0xff] %vm30_vm0, %v309_v40  ;;  %731 = vlog2.f32 %v471_v41 }
 0x1e2   :  { %v296_v4 = vpop.xlane.xlu1 %295 }
 0x1e3   :  { %v310_v39 = vadd.f32 %v296_v4, %v182_v16  ;;  %v728_v48 = vpop.eup %727 }
 0x1e4   :  { %v472_v24 = vld [vmem:[#allocation3 + $0x18] sm:$0xff]  ;;  %v478_v58 = vmul.f32 0.6931472, %v728_v48 }
 0x1e5   :  { %319 = vst.msk [vmem:[#allocation3 + $0x28] sm:$0xff] %vm30_vm0, %v310_v39  ;;  %733 = vlog2.f32 %v472_v24  ;;  %v497_v24 = vld [vmem:[#allocation2 + $0x20] sm:$0xff] }
 0x1e6   :  { %v300_v19 = vpop.xlane.xlu0 %299  ;;  %v501_v43 = vadd.f32 %v493_v15, %v478_v58 }
 0x1e7   :  { %v311_v8 = vadd.f32 %v300_v19, %v183_v21  ;;  %v730_v62 = vpop.eup %729  ;;  %v496_v21 = vld [vmem:[#allocation2 + $0x18] sm:$0xff] }
 0x1e8   :  { %v473_v59 = vld [vmem:[#allocation3 + $0x20] sm:$0xff]  ;;  %v480_v55 = vmul.f32 0.6931472, %v730_v62 }
 0x1e9   :  { %320 = vst.msk [vmem:[#allocation3 + $0x30] sm:$0xff] %vm30_vm0, %v311_v8  ;;  %735 = vlog2.f32 %v473_v59 }
 0x1ea   :  { %v304_v1 = vpop.xlane.xlu1 %303  ;;  %v421_v45 = vpop.xlane.xlu0 %420  ;;  %v502_v25 = vadd.f32 %v494_v9, %v480_v55 }
 0x1eb   :  { %v312_v34 = vadd.f32 %v304_v1, %v184_v18  ;;  %v450_v27 = vadd.f32 %v421_v45, %v394_v23  ;;  %v732_v57 = vpop.eup %731 }
 0x1ec   :  { %v474_v49 = vld [vmem:[#allocation3 + $0x28] sm:$0xff]  ;;  %v482_v35 = vmul.f32 0.6931472, %v732_v57 }
 0x1ed   :  { %321 = vst.msk [vmem:[#allocation3 + $0x38] sm:$0xff] %vm30_vm0, %v312_v34  ;;  %458 = vst.msk [vmem:[#allocation4] sm:$0xff] %vm30_vm0, %v450_v27  ;;  %737 = vlog2.f32 %v474_v49 }
 0x1ee   :  { %v425_v51 = vpop.xlane.xlu1 %424  ;;  %v429_v53 = vpop.xlane.xlu0 %428  ;;  %v503_v4 = vadd.f32 %v495_v20, %v482_v35 }
 0x1ef   :  { %v451_v47 = vadd.f32 %v425_v51, %v395_v3  ;;  %v452_v52 = vadd.f32 %v429_v53, %v396_v46  ;;  %v734_v42 = vpop.eup %733  ;;  %v499_v51 = vld [vmem:[#allocation2 + $0x30] sm:$0xff] }
 0x1f0   :  { %v475_v60 = vld [vmem:[#allocation3 + $0x30] sm:$0xff]  ;;  %v484_v2 = vmul.f32 0.6931472, %v734_v42 }
 0x1f1   :  { %459 = vst.msk [vmem:[#allocation4 + $0x8] sm:$0xff] %vm30_vm0, %v451_v47  ;;  %460 = vst.msk [vmem:[#allocation4 + $0x10] sm:$0xff] %vm30_vm0, %v452_v52  ;;  %739 = vlog2.f32 %v475_v60  ;;  %v498_v47 = vld [vmem:[#allocation2 + $0x28] sm:$0xff] }
 0x1f2   :  { %v433_v61 = vpop.xlane.xlu1 %432  ;;  %v437_v7 = vpop.xlane.xlu0 %436  ;;  %v504_v23 = vadd.f32 %v496_v21, %v484_v2 }
 0x1f3   :  { %v736_v32 = vpop.eup %735  ;;  %v453_v44 = vadd.f32 %v433_v61, %v397_v30  ;;  %v454_v63 = vadd.f32 %v437_v7, %v398_v54 }
 0x1f4   :  { %v476_v38 = vld [vmem:[#allocation3 + $0x38] sm:$0xff]  ;;  %v509_v26 = vld [vmem:[#allocation4] sm:$0xff]  ;;  %v486_v50 = vmul.f32 0.6931472, %v736_v32 }
 0x1f5   :  { %461 = vst.msk [vmem:[#allocation4 + $0x18] sm:$0xff] %vm30_vm0, %v453_v44  ;;  %462 = vst.msk [vmem:[#allocation4 + $0x20] sm:$0xff] %vm30_vm0, %v454_v63  ;;  %741 = vlog2.f32 %v476_v38  ;;  %v517_v12 = vsub.f32 %v501_v43, %v509_v26  ;;  %v500_v43 = vld [vmem:[#allocation2 + $0x38] sm:$0xff] }
 0x1f6   :  { %v441_v14 = vpop.xlane.xlu1 %440  ;;  %v445_v22 = vpop.xlane.xlu0 %444  ;;  %v505_v59 = vadd.f32 %v497_v24, %v486_v50 }
 0x1f7   :  { %v455_v40 = vadd.f32 %v441_v14, %v399_v10  ;;  %v456_v16 = vadd.f32 %v445_v22, %v400_v13  ;;  %v738_v5 = vpop.eup %737  ;;  %v568_v29 = vsel %vm552_vm14, %v517_v12, 0.0 }
 0x1f8   :  { %v510_v39 = vld [vmem:[#allocation4 + $0x8] sm:$0xff]  ;;  %v511_v41 = vld [vmem:[#allocation4 + $0x10] sm:$0xff]  ;;  %v488_v45 = vmul.f32 0.6931472, %v738_v5  ;;  %v576_v49 = vsel %vm30_vm0, %v568_v29, 0.0 }
 0x1f9   :  { %463 = vst.msk [vmem:[#allocation4 + $0x28] sm:$0xff] %vm30_vm0, %v455_v40  ;;  %464 = vst.msk [vmem:[#allocation4 + $0x30] sm:$0xff] %vm30_vm0, %v456_v16  ;;  %v518_v6 = vsub.f32 %v502_v25, %v510_v39  ;;  %v519_v19 = vsub.f32 %v503_v4, %v511_v41 }
 0x1fa   :  { %v449_v8 = vpop.xlane.xlu1 %448  ;;  %v506_v33 = vadd.f32 %v498_v47, %v488_v45 }
 0x1fb   :  { %v740_v18 = vpop.eup %739  ;;  %v457_v1 = vadd.f32 %v449_v8, %v401_v11  ;;  %v569_v48 = vsel %vm553_vm12, %v518_v6, 0.0  ;;  %v570_v34 = vsel %vm554_vm15, %v519_v19, 0.0 }
 0x1fc   :  { %v490_v27 = vmul.f32 0.6931472, %v740_v18  ;;  %v512_v3 = vld [vmem:[#allocation4 + $0x18] sm:$0xff]  ;;  %v513_v46 = vld [vmem:[#allocation4 + $0x20] sm:$0xff]  ;;  %v577_v31 = vsel %vm30_vm0, %v569_v48, 0.0  ;;  %v579_v56 = vsel %vm30_vm0, %v570_v34, 0.0 }
 0x1fd   :  { %465 = vst.msk [vmem:[#allocation4 + $0x38] sm:$0xff] %vm30_vm0, %v457_v1  ;;  %v520_v53 = vsub.f32 %v504_v23, %v512_v3  ;;  %v521_v58 = vsub.f32 %v505_v59, %v513_v46  ;;  %v578_v62 = vadd.f32 %v577_v31, %v576_v49 }
 0x1fe   :  { %v507_v52 = vadd.f32 %v499_v51, %v490_v27  ;;  %v634_v17 = vpop.xlane.xlu1 %633 }
 0x1ff   :  { %v742_v57 = vpop.eup %741  ;;  %v571_v30 = vsel %vm555_vm3, %v520_v53, 0.0  ;;  %v572_v54 = vsel %vm556_vm2, %v521_v58, 0.0  ;;  %v580_v60 = vadd.f32 %v579_v56, %v578_v62  ;;  %v635_v20 = vrot.slane %v634_v17, 4 }
 0x200   :  { %v492_v15 = vmul.f32 0.6931472, %v742_v57  ;;  %v514_v42 = vld [vmem:[#allocation4 + $0x28] sm:$0xff]  ;;  %v515_v61 = vld [vmem:[#allocation4 + $0x30] sm:$0xff]  ;;  %v581_v7 = vsel %vm30_vm0, %v571_v30, 0.0  ;;  %v583_v55 = vsel %vm30_vm0, %v572_v54, 0.0 }
 0x201   :  { %v522_v32 = vsub.f32 %v506_v33, %v514_v42  ;;  %v523_v44 = vsub.f32 %v507_v52, %v515_v61  ;;  %v582_v63 = vadd.f32 %v581_v7, %v580_v60  ;;  %v636_v37 = vadd.f32 %v635_v20, %v634_v17 }
 0x202   :  { %v508_v10 = vadd.f32 %v500_v43, %v492_v15 }
 0x203   :  { %v573_v0 = vsel %vm557_vm4, %v522_v32, 0.0  ;;  %v574_v36 = vsel %vm558_vm5, %v523_v44, 0.0  ;;  %v584_v35 = vadd.f32 %v583_v55, %v582_v63  ;;  %v637_v40 = vrot.slane %v636_v37, 2 }
 0x204   :  { %v516_v13 = vld [vmem:[#allocation4 + $0x38] sm:$0xff]  ;;  %v585_v38 = vsel %vm30_vm0, %v573_v0, 0.0  ;;  %v587_v14 = vsel %vm30_vm0, %v574_v36, 0.0 }
 0x205   :  { %v524_v26 = vsub.f32 %v508_v10, %v516_v13  ;;  %v586_v12 = vadd.f32 %v585_v38, %v584_v35  ;;  %v638_v5 = vadd.f32 %v637_v40, %v636_v37 }
 0x207   :  { %v575_v22 = vsel %vm559_vm6, %v524_v26, 0.0  ;;  %v588_v2 = vadd.f32 %v587_v14, %v586_v12  ;;  %v639_v41 = vrot.slane %v638_v5, 1 }
 0x208   :  { %v589_v50 = vsel %vm30_vm0, %v575_v22, 0.0 }
 0x209   :  { %v590_v9 = vadd.f32 %v589_v50, %v588_v2  ;;  %v640_v28 = vadd.f32 %v639_v41, %v638_v5 }
 0x20b   :  { %591 = vadd.xlane.f32.xlu0 %v590_v9 }
 0x298   :  { %v592_v16 = vpop.xlane.xlu0 %591 }
 0x299   :  { %v593_v25 = vrot.slane %v592_v16, 4 }
 0x29b   :  { %v594_v4 = vadd.f32 %v593_v25, %v592_v16 }
 0x29d   :  { %v595_v11 = vrot.slane %v594_v4, 2 }
 0x29f   :  { %v596_v39 = vadd.f32 %v595_v11, %v594_v4 }
 0x2a1   :  { %v597_v21 = vrot.slane %v596_v39, 1 }
 0x2a3   :  { %v598_v24 = vadd.f32 %v597_v21, %v596_v39 }
 0x2a5   :  { %666 = vpush %v598_v24 }
 0x2a6   :  { %668 = vpush %v640_v28 }
 0x2d6   :  { %s667_s1 = spop %666 }
 0x2d7   :  { %601 = sst [smem:[#allocation8]] %s667_s1  ;;  %s669_s10 = spop %668 }
 0x2d8   :  { %643 = sst [smem:[#allocation8 + $0x1]] %s669_s10 }
 0x2d9   :  { %774 = shalt.err (!%p771_p10)
}
 0x2da   :  { %s785_s18 = smov [#allocation8]  }
 0x2db   :  { %651 = dma.smem_to_hbm %s785_s18, 16, %s1309_s2, [#allocation7]  }
 0x2dc   :  { %777 = dma.done.wait [#allocation7], 16  }
 0x2dd   :  { %778 = vsyncadd [#allocation7], 4294967280 }
 0x2de   :  { %655 = sfence }
 0x2df   :  { %656 = vsyncpa [#allocation6], 1 }
 0x2e0   :  { %657 = vsyncpa [#allocation7], 1 }

</bundles_post_ra>
